<compile_context>
chip_gen: v6e
topology: v6e:2x2x1
jax: 0.10.0
libtpu: 0.0.40
codegen_flags: <defaults>
</compile_context>

<pallas_src>
import functools

import jax
import jax.numpy as jnp
from jax.experimental import pallas as pl
from jax.experimental.pallas import tpu as pltpu

EPS = 1e-5
NEG_SLOPE = 0.1
LANE = 128
VMEM_LIMIT = 32 * 1024 * 1024


def _round_up(n, m):
    return ((n + m - 1) // m) * m


def _stats_kernel(p_ref, w_ref, params_ref, stats_ref, sum_sc, sq_sc, *, m_valid):
    """Pass 1: accumulate per-channel sum / sum-of-squares of (conv - pilot)."""
    n = pl.program_id(0)
    j = pl.program_id(1)
    tm = p_ref.shape[1]

    @pl.when((n == 0) & (j == 0))
    def _():
        sum_sc[...] = jnp.zeros_like(sum_sc)
        sq_sc[...] = jnp.zeros_like(sq_sc)

    # (Cout, K) @ (K, tm) -> (Cout, tm), bf16 inputs, f32 accumulation on the MXU.
    conv = jnp.dot(w_ref[...], p_ref[...], preferred_element_type=jnp.float32)
    d = conv - params_ref[:, 0:1]                      # pilot shift (stability)
    col = jax.lax.broadcasted_iota(jnp.int32, (1, tm), 1) + j * tm
    d = jnp.where(col < m_valid, d, 0.0)               # mask padded M columns
    sum_sc[...] += jnp.sum(d, axis=1, keepdims=True)
    sq_sc[...] += jnp.sum(d * d, axis=1, keepdims=True)

    @pl.when((n == pl.num_programs(0) - 1) & (j == pl.num_programs(1) - 1))
    def _():
        stats_ref[:, 0:1] = sum_sc[...]
        stats_ref[:, 1:2] = sq_sc[...]


def _apply_kernel(p_ref, w_ref, stats_ref, params_ref, out_ref, *, inv_count):
    """Pass 2: recompute the conv tile, fold BN into scale/shift, LeakyReLU(0.1)."""
    conv = jnp.dot(w_ref[...], p_ref[...], preferred_element_type=jnp.float32)
    pilot = params_ref[:, 0:1]
    gamma = params_ref[:, 1:2]
    beta = params_ref[:, 2:3]
    mean_d = stats_ref[:, 0:1] * inv_count
    var = jnp.maximum(stats_ref[:, 1:2] * inv_count - mean_d * mean_d, 0.0)
    scale = gamma * jax.lax.rsqrt(var + EPS)           # EUP rsqrt
    shift = beta - (pilot + mean_d) * scale
    y = conv * scale + shift
    out_ref[...] = jnp.where(y > 0, y, NEG_SLOPE * y).astype(out_ref.dtype)


def _im2col_s2_k3_p1(x_bf16):
    """(N, Cin, H, W) bf16 -> patches (N, Cin*9, Ho*Wo), K ordered (ci, kh, kw)."""
    N, Cin, H, W = x_bf16.shape
    Ho = (H + 2 - 3) // 2 + 1
    Wo = (W + 2 - 3) // 2 + 1
    xp = jnp.pad(x_bf16, ((0, 0), (0, 0), (1, 1), (1, 1)))
    taps = [xp[:, :, kh:kh + 2 * Ho:2, kw:kw + 2 * Wo:2]
            for kh in range(3) for kw in range(3)]
    p = jnp.stack(taps, axis=2)                        # (N, Cin, 9, Ho, Wo)
    return p.reshape(N, Cin * 9, Ho * Wo), (Ho, Wo)


@functools.partial(jax.jit, static_argnames=("tile_m",))
def downsampling_block(x, weight, gamma, beta, tile_m=2048):
    """x: (N, Cin, H, W) f32; weight: (Cout, Cin, 3, 3); gamma/beta: (Cout,)."""
    N, Cin, H, W = x.shape
    Cout = weight.shape[0]
    K = Cin * 9

    patches, (Ho, Wo) = _im2col_s2_k3_p1(x.astype(jnp.bfloat16))
    M_img = Ho * Wo                                    # output positions per image
    count = N * M_img                                  # BN batch-statistics count

    # tm is the lane (last) dim of every block: either a multiple of 128 (lane-dense,
    # unmasked stores) or the full padded axis (legal full-dim block).
    if M_img <= tile_m:
        tm = _round_up(M_img, 8)
    else:
        cap = max(LANE, (4 * 1024 * 1024) // (2 * K))  # keep 3 bf16 patch bufs modest
        tm = max(LANE, (min(tile_m, cap) // LANE) * LANE)
    M_pad = _round_up(M_img, tm)
    T = M_pad // tm
    nbuf = 3 if N * T >= 3 else 2

    if M_pad != M_img:
        patches = jnp.pad(patches, ((0, 0), (0, 0), (0, M_pad - M_img)))

    w2 = weight.reshape(Cout, K).astype(jnp.bfloat16)          # (Cout, K)

    # Pilot ~= per-channel conv-output mean (conv applied to the mean input, borders
    # ignored); only used as a numerical shift, so the approximation is harmless.
    x_mean_c = jnp.mean(x.astype(jnp.float32), axis=(0, 2, 3))          # (Cin,)
    pilot = weight.astype(jnp.float32).sum(axis=(2, 3)) @ x_mean_c      # (Cout,)
    params = jnp.stack(
        [pilot, gamma.astype(jnp.float32), beta.astype(jnp.float32)], axis=1)  # (Cout,3)

    patch_spec = pl.BlockSpec((None, K, tm), lambda n, j: (n, 0, j),
                              pipeline_mode=pl.Buffered(nbuf))
    w_spec = pl.BlockSpec((Cout, K), lambda n, j: (0, 0))
    par_spec = pl.BlockSpec((Cout, 3), lambda n, j: (0, 0))

    # ---- Pass 1: per-channel first/second moments of the conv output. ----
    stats = pl.pallas_call(
        functools.partial(_stats_kernel, m_valid=M_img),
        out_shape=jax.ShapeDtypeStruct((Cout, 2), jnp.float32),
        grid_spec=pltpu.PrefetchScalarGridSpec(
            num_scalar_prefetch=0,
            grid=(N, T),
            in_specs=[patch_spec, w_spec, par_spec],
            out_specs=pl.BlockSpec((Cout, 2), lambda n, j: (0, 0)),
            scratch_shapes=[pltpu.VMEM((Cout, 1), jnp.float32),
                            pltpu.VMEM((Cout, 1), jnp.float32)]),
        compiler_params=pltpu.CompilerParams(
            dimension_semantics=("arbitrary", "arbitrary"),
            vmem_limit_bytes=VMEM_LIMIT),
    )(patches, w2, params)

    # ---- Pass 2: recompute conv tiles, apply folded BN + LeakyReLU, channel-major. ----
    out = pl.pallas_call(
        functools.partial(_apply_kernel, inv_count=1.0 / float(count)),
        out_shape=jax.ShapeDtypeStruct((N, Cout, M_pad), jnp.float32),
        grid_spec=pltpu.PrefetchScalarGridSpec(
            num_scalar_prefetch=0,
            grid=(N, T),
            in_specs=[patch_spec, w_spec,
                      pl.BlockSpec((Cout, 2), lambda n, j: (0, 0)),
                      par_spec],
            out_specs=pl.BlockSpec((None, Cout, tm), lambda n, j: (n, 0, j)),
        ),
        compiler_params=pltpu.CompilerParams(
            dimension_semantics=("parallel", "parallel"),
            vmem_limit_bytes=VMEM_LIMIT),
    )(patches, w2, stats, params)

    if M_pad != M_img:
        out = out[:, :, :M_img]
    return out.reshape(N, Cout, Ho, Wo)                # already NCHW, no transpose


def reference_forward(x, weight, gamma, beta):
    # Mirrors the kernel numerics: bf16 conv inputs, f32 accumulation, f32 BN/LeakyReLU.
    conv = jax.lax.conv_general_dilated(
        x.astype(jnp.bfloat16), weight.astype(jnp.bfloat16),
        window_strides=(2, 2), padding=((1, 1), (1, 1)),
        dimension_numbers=('NCHW', 'OIHW', 'NCHW'),
        preferred_element_type=jnp.float32)
    mean = conv.mean(axis=(0, 2, 3), keepdims=True)
    var = ((conv - mean) ** 2).mean(axis=(0, 2, 3), keepdims=True)
    y = (conv - mean) * jax.lax.rsqrt(var + EPS) \
        * gamma.reshape(1, -1, 1, 1).astype(jnp.float32) \
        + beta.reshape(1, -1, 1, 1).astype(jnp.float32)
    return jnp.where(y > 0, y, NEG_SLOPE * y)


if __name__ == "__main__":
    key = jax.random.PRNGKey(0)
    k_x, k_w, k_g, k_b = jax.random.split(key, 4)

    N, Cin, H, W = 2, 4, 16, 16
    Cout = 8

    x = jax.random.normal(k_x, (N, Cin, H, W), dtype=jnp.float32)
    # Deterministic synthetic parameters (Conv2d weight + BN affine params).
    weight = jax.random.normal(k_w, (Cout, Cin, 3, 3), dtype=jnp.float32) * 0.1
    gamma = 1.0 + 0.1 * jax.random.normal(k_g, (Cout,), dtype=jnp.float32)
    beta = 0.1 * jax.random.normal(k_b, (Cout,), dtype=jnp.float32)

    out = downsampling_block(x, weight, gamma, beta)
    out = jax.block_until_ready(out)

    ref = reference_forward(x, weight, gamma, beta)
    assert out.shape == (N, Cout, H // 2, W // 2), out.shape
    max_err = float(jnp.max(jnp.abs(out - ref)))
    assert jnp.allclose(out, ref, atol=1e-3, rtol=1e-3), max_err

    print("KERNEL_OK")
</pallas_src>

<mosaic_0001>
module attributes {stable_mosaic.version = 11 : i64} {
  func.func @_stats_kernel(%arg0: i32, %arg1: i32, %arg2: memref<1x36x64xbf16, #tpu.memory_space<vmem>>, %arg3: memref<8x36xbf16, #tpu.memory_space<vmem>>, %arg4: memref<8x3xf32, #tpu.memory_space<vmem>>, %arg5: memref<8x2xf32, #tpu.memory_space<vmem>>, %arg6: memref<8x1xf32, #tpu.memory_space<vmem>>, %arg7: memref<8x1xf32, #tpu.memory_space<vmem>>) attributes {dimension_semantics = [#tpu.dimension_semantics<arbitrary>, #tpu.dimension_semantics<arbitrary>], iteration_bounds = array<i64: 2, 1>, scalar_prefetch = 0 : i64, scratch_operands = 2 : i64, tpu.core_type = #tpu.core_type<tc>, window_params = [{pipeline_mode = #tpu.pipeline_mode<double_buffered>, transform_indices = @transform_0, window_bounds = array<i64: 1, 36, 64>}, {pipeline_mode = #tpu.pipeline_mode<synchronous>, transform_indices = @transform_1, window_bounds = array<i64: 8, 36>}, {pipeline_mode = #tpu.pipeline_mode<synchronous>, transform_indices = @transform_2, window_bounds = array<i64: 8, 3>}, {pipeline_mode = #tpu.pipeline_mode<synchronous>, transform_indices = @transform_3, window_bounds = array<i64: 8, 2>}]} {
    %c0_i32 = arith.constant 0 : i32
    %0 = arith.cmpi eq, %arg0, %c0_i32 : i32
    %c0_i32_0 = arith.constant 0 : i32
    %1 = arith.cmpi eq, %arg1, %c0_i32_0 : i32
    %2 = arith.andi %0, %1 : i1
    %3 = arith.extui %2 : i1 to i32
    %c0_i32_1 = arith.constant 0 : i32
    %4 = arith.cmpi ne, %3, %c0_i32_1 : i32
    scf.if %4 {
      %cst_22 = arith.constant 0.000000e+00 : f32
      %38 = vector.broadcast %cst_22 : f32 to vector<8x1xf32>
      %c0_23 = arith.constant 0 : index
      %c0_24 = arith.constant 0 : index
      %39 = vector.load %arg6[%c0_23, %c0_24] : memref<8x1xf32, #tpu.memory_space<vmem>>, vector<8x1xf32>
      tpu.vector_store %arg6[%c0_23, %c0_24], %38 {strides = array<i32>} : memref<8x1xf32, #tpu.memory_space<vmem>>, vector<8x1xf32>,
      %cst_25 = arith.constant 0.000000e+00 : f32
      %40 = vector.broadcast %cst_25 : f32 to vector<8x1xf32>
      %c0_26 = arith.constant 0 : index
      %c0_27 = arith.constant 0 : index
      %41 = vector.load %arg7[%c0_26, %c0_27] : memref<8x1xf32, #tpu.memory_space<vmem>>, vector<8x1xf32>
      tpu.vector_store %arg7[%c0_26, %c0_27], %40 {strides = array<i32>} : memref<8x1xf32, #tpu.memory_space<vmem>>, vector<8x1xf32>,
    } else {
    }
    %c0 = arith.constant 0 : index
    %c0_2 = arith.constant 0 : index
    %5 = vector.load %arg3[%c0, %c0_2] : memref<8x36xbf16, #tpu.memory_space<vmem>>, vector<8x36xbf16>
    %c0_3 = arith.constant 0 : index
    %c0_4 = arith.constant 0 : index
    %c0_5 = arith.constant 0 : index
    %6 = vector.load %arg2[%c0_3, %c0_4, %c0_5] : memref<1x36x64xbf16, #tpu.memory_space<vmem>>, vector<1x36x64xbf16>
    %7 = vector.shape_cast %6 : vector<1x36x64xbf16> to vector<36x64xbf16>
    %cst = arith.constant dense<0.000000e+00> : vector<8x64xf32>
    %8 = tpu.matmul %5, %7, %cst {dimension_numbers = #tpu.dot_dimension_numbers<[1], [0], [0], [1], [0, 0, 1, 1], [], []>} : vector<8x36xbf16>, vector<36x64xbf16>, vector<8x64xf32> -> vector<8x64xf32>
    %c0_6 = arith.constant 0 : index
    %c0_7 = arith.constant 0 : index
    %9 = vector.load %arg4[%c0_6, %c0_7] : memref<8x3xf32, #tpu.memory_space<vmem>>, vector<8x1xf32>
    %10 = vector.broadcast %9 : vector<8x1xf32> to vector<8x64xf32>
    %11 = arith.subf %8, %10 : vector<8x64xf32>
    %12 = tpu.iota {dimensions = array<i32: 1>} : vector<1x64xi32>
    %c64_i32 = arith.constant 64 : i32
    %13 = arith.muli %arg1, %c64_i32 : i32
    %14 = vector.broadcast %13 : i32 to vector<1x64xi32>
    %15 = arith.addi %12, %14 : vector<1x64xi32>
    %c64_i32_8 = arith.constant 64 : i32
    %16 = vector.broadcast %c64_i32_8 : i32 to vector<1x64xi32>
    %17 = arith.cmpi slt, %15, %16 : vector<1x64xi32>
    %cst_9 = arith.constant 0.000000e+00 : f32
    %18 = vector.shape_cast %17 : vector<1x64xi1> to vector<1x64xi1>
    %19 = vector.broadcast %18 : vector<1x64xi1> to vector<8x64xi1>
    %20 = vector.broadcast %cst_9 : f32 to vector<8x64xf32>
    %21 = arith.select %19, %11, %20 : vector<8x64xi1>, vector<8x64xf32>
    %c0_10 = arith.constant 0 : index
    %c0_11 = arith.constant 0 : index
    %22 = vector.load %arg6[%c0_10, %c0_11] : memref<8x1xf32, #tpu.memory_space<vmem>>, vector<8x1xf32>
    %cst_12 = arith.constant dense<0.000000e+00> : vector<8xf32>
    %23 = vector.multi_reduction <add>, %21, %cst_12 [1] : vector<8x64xf32> to vector<8xf32>
    %24 = vector.shape_cast %23 : vector<8xf32> to vector<8x1xf32>
    %25 = arith.addf %22, %24 : vector<8x1xf32>
    %c0_13 = arith.constant 0 : index
    %c0_14 = arith.constant 0 : index
    %26 = vector.load %arg6[%c0_13, %c0_14] : memref<8x1xf32, #tpu.memory_space<vmem>>, vector<8x1xf32>
    tpu.vector_store %arg6[%c0_13, %c0_14], %25 {strides = array<i32>} : memref<8x1xf32, #tpu.memory_space<vmem>>, vector<8x1xf32>,
    %c0_15 = arith.constant 0 : index
    %c0_16 = arith.constant 0 : index
    %27 = vector.load %arg7[%c0_15, %c0_16] : memref<8x1xf32, #tpu.memory_space<vmem>>, vector<8x1xf32>
    %28 = arith.mulf %21, %21 : vector<8x64xf32>
    %cst_17 = arith.constant dense<0.000000e+00> : vector<8xf32>
    %29 = vector.multi_reduction <add>, %28, %cst_17 [1] : vector<8x64xf32> to vector<8xf32>
    %30 = vector.shape_cast %29 : vector<8xf32> to vector<8x1xf32>
    %31 = arith.addf %27, %30 : vector<8x1xf32>
    %c0_18 = arith.constant 0 : index
    %c0_19 = arith.constant 0 : index
    %32 = vector.load %arg7[%c0_18, %c0_19] : memref<8x1xf32, #tpu.memory_space<vmem>>, vector<8x1xf32>
    tpu.vector_store %arg7[%c0_18, %c0_19], %31 {strides = array<i32>} : memref<8x1xf32, #tpu.memory_space<vmem>>, vector<8x1xf32>,
    %c1_i32 = arith.constant 1 : i32
    %33 = arith.cmpi eq, %arg0, %c1_i32 : i32
    %c0_i32_20 = arith.constant 0 : i32
    %34 = arith.cmpi eq, %arg1, %c0_i32_20 : i32
    %35 = arith.andi %33, %34 : i1
    %36 = arith.extui %35 : i1 to i32
    %c0_i32_21 = arith.constant 0 : i32
    %37 = arith.cmpi ne, %36, %c0_i32_21 : i32
    scf.if %37 {
      %c0_22 = arith.constant 0 : index
      %c0_23 = arith.constant 0 : index
      %38 = vector.load %arg6[%c0_22, %c0_23] : memref<8x1xf32, #tpu.memory_space<vmem>>, vector<8x1xf32>
      %c0_24 = arith.constant 0 : index
      %c0_25 = arith.constant 0 : index
      %39 = vector.load %arg5[%c0_24, %c0_25] : memref<8x2xf32, #tpu.memory_space<vmem>>, vector<8x1xf32>
      tpu.vector_store %arg5[%c0_24, %c0_25], %38 {strides = array<i32>} : memref<8x2xf32, #tpu.memory_space<vmem>>, vector<8x1xf32>,
      %c0_26 = arith.constant 0 : index
      %c0_27 = arith.constant 0 : index
      %40 = vector.load %arg7[%c0_26, %c0_27] : memref<8x1xf32, #tpu.memory_space<vmem>>, vector<8x1xf32>
      %c0_28 = arith.constant 0 : index
      %c1 = arith.constant 1 : index
      %41 = vector.load %arg5[%c0_28, %c1] : memref<8x2xf32, #tpu.memory_space<vmem>>, vector<8x1xf32>
      tpu.vector_store %arg5[%c0_28, %c1], %40 {strides = array<i32>} : memref<8x2xf32, #tpu.memory_space<vmem>>, vector<8x1xf32>,
    } else {
    }
    return
  }
  func.func @transform_0(%arg0: i32, %arg1: i32) -> (i32, i32, i32) {
    %c0_i32 = arith.constant 0 : i32
    %c0_i32_0 = arith.constant 0 : i32
    return %arg0, %c0_i32, %arg1 : i32, i32, i32
  }
  func.func @transform_1(%arg0: i32, %arg1: i32) -> (i32, i32) {
    %c0_i32 = arith.constant 0 : i32
    %c0_i32_0 = arith.constant 0 : i32
    %c0_i32_1 = arith.constant 0 : i32
    return %c0_i32, %c0_i32_0 : i32, i32
  }
  func.func @transform_2(%arg0: i32, %arg1: i32) -> (i32, i32) {
    %c0_i32 = arith.constant 0 : i32
    %c0_i32_0 = arith.constant 0 : i32
    %c0_i32_1 = arith.constant 0 : i32
    return %c0_i32, %c0_i32_0 : i32, i32
  }
  func.func @transform_3(%arg0: i32, %arg1: i32) -> (i32, i32) {
    %c0_i32 = arith.constant 0 : i32
    %c0_i32_0 = arith.constant 0 : i32
    %c0_i32_1 = arith.constant 0 : i32
    return %c0_i32, %c0_i32_0 : i32, i32
  }
}

module attributes {stable_mosaic.version = 11 : i64} {
  func.func @_apply_kernel(%arg0: i32, %arg1: i32, %arg2: memref<1x36x64xbf16, #tpu.memory_space<vmem>>, %arg3: memref<8x36xbf16, #tpu.memory_space<vmem>>, %arg4: memref<8x2xf32, #tpu.memory_space<vmem>>, %arg5: memref<8x3xf32, #tpu.memory_space<vmem>>, %arg6: memref<1x8x64xf32, #tpu.memory_space<vmem>>) attributes {dimension_semantics = [#tpu.dimension_semantics<parallel>, #tpu.dimension_semantics<parallel>], iteration_bounds = array<i64: 2, 1>, scalar_prefetch = 0 : i64, scratch_operands = 0 : i64, tpu.core_type = #tpu.core_type<tc>, window_params = [{pipeline_mode = #tpu.pipeline_mode<double_buffered>, transform_indices = @transform_0, window_bounds = array<i64: 1, 36, 64>}, {pipeline_mode = #tpu.pipeline_mode<synchronous>, transform_indices = @transform_1, window_bounds = array<i64: 8, 36>}, {pipeline_mode = #tpu.pipeline_mode<synchronous>, transform_indices = @transform_2, window_bounds = array<i64: 8, 2>}, {pipeline_mode = #tpu.pipeline_mode<synchronous>, transform_indices = @transform_3, window_bounds = array<i64: 8, 3>}, {transform_indices = @transform_4, window_bounds = array<i64: 1, 8, 64>}]} {
    %c0 = arith.constant 0 : index
    %c0_0 = arith.constant 0 : index
    %0 = vector.load %arg3[%c0, %c0_0] : memref<8x36xbf16, #tpu.memory_space<vmem>>, vector<8x36xbf16>
    %c0_1 = arith.constant 0 : index
    %c0_2 = arith.constant 0 : index
    %c0_3 = arith.constant 0 : index
    %1 = vector.load %arg2[%c0_1, %c0_2, %c0_3] : memref<1x36x64xbf16, #tpu.memory_space<vmem>>, vector<1x36x64xbf16>
    %2 = vector.shape_cast %1 : vector<1x36x64xbf16> to vector<36x64xbf16>
    %cst = arith.constant dense<0.000000e+00> : vector<8x64xf32>
    %3 = tpu.matmul %0, %2, %cst {dimension_numbers = #tpu.dot_dimension_numbers<[1], [0], [0], [1], [0, 0, 1, 1], [], []>} : vector<8x36xbf16>, vector<36x64xbf16>, vector<8x64xf32> -> vector<8x64xf32>
    %c0_4 = arith.constant 0 : index
    %c0_5 = arith.constant 0 : index
    %4 = vector.load %arg5[%c0_4, %c0_5] : memref<8x3xf32, #tpu.memory_space<vmem>>, vector<8x1xf32>
    %c0_6 = arith.constant 0 : index
    %c1 = arith.constant 1 : index
    %5 = vector.load %arg5[%c0_6, %c1] : memref<8x3xf32, #tpu.memory_space<vmem>>, vector<8x1xf32>
    %c0_7 = arith.constant 0 : index
    %c2 = arith.constant 2 : index
    %6 = vector.load %arg5[%c0_7, %c2] : memref<8x3xf32, #tpu.memory_space<vmem>>, vector<8x1xf32>
    %c0_8 = arith.constant 0 : index
    %c0_9 = arith.constant 0 : index
    %7 = vector.load %arg4[%c0_8, %c0_9] : memref<8x2xf32, #tpu.memory_space<vmem>>, vector<8x1xf32>
    %cst_10 = arith.constant 7.812500e-03 : f32
    %8 = vector.broadcast %cst_10 : f32 to vector<8x1xf32>
    %9 = arith.mulf %7, %8 : vector<8x1xf32>
    %c0_11 = arith.constant 0 : index
    %c1_12 = arith.constant 1 : index
    %10 = vector.load %arg4[%c0_11, %c1_12] : memref<8x2xf32, #tpu.memory_space<vmem>>, vector<8x1xf32>
    %cst_13 = arith.constant 7.812500e-03 : f32
    %11 = vector.broadcast %cst_13 : f32 to vector<8x1xf32>
    %12 = arith.mulf %10, %11 : vector<8x1xf32>
    %13 = arith.mulf %9, %9 : vector<8x1xf32>
    %14 = arith.subf %12, %13 : vector<8x1xf32>
    %cst_14 = arith.constant 0.000000e+00 : f32
    %15 = vector.broadcast %cst_14 : f32 to vector<8x1xf32>
    %16 = arith.maximumf %14, %15 : vector<8x1xf32>
    %cst_15 = arith.constant 9.99999974E-6 : f32
    %17 = vector.broadcast %cst_15 : f32 to vector<8x1xf32>
    %18 = arith.addf %16, %17 : vector<8x1xf32>
    %19 = math.rsqrt %18 : vector<8x1xf32>
    %20 = arith.mulf %5, %19 : vector<8x1xf32>
    %21 = arith.addf %4, %9 : vector<8x1xf32>
    %22 = arith.mulf %21, %20 : vector<8x1xf32>
    %23 = arith.subf %6, %22 : vector<8x1xf32>
    %24 = vector.broadcast %20 : vector<8x1xf32> to vector<8x64xf32>
    %25 = arith.mulf %3, %24 : vector<8x64xf32>
    %26 = vector.broadcast %23 : vector<8x1xf32> to vector<8x64xf32>
    %27 = arith.addf %25, %26 : vector<8x64xf32>
    %cst_16 = arith.constant 0.000000e+00 : f32
    %28 = vector.broadcast %cst_16 : f32 to vector<8x64xf32>
    %29 = arith.cmpf ogt, %27, %28 : vector<8x64xf32>
    %cst_17 = arith.constant 1.000000e-01 : f32
    %30 = vector.broadcast %cst_17 : f32 to vector<8x64xf32>
    %31 = arith.mulf %30, %27 : vector<8x64xf32>
    %32 = arith.select %29, %27, %31 : vector<8x64xi1>, vector<8x64xf32>
    %c0_18 = arith.constant 0 : index
    %c0_19 = arith.constant 0 : index
    %c0_20 = arith.constant 0 : index
    %33 = vector.load %arg6[%c0_18, %c0_19, %c0_20] : memref<1x8x64xf32, #tpu.memory_space<vmem>>, vector<1x8x64xf32>
    %34 = vector.shape_cast %33 : vector<1x8x64xf32> to vector<8x64xf32>
    %35 = vector.shape_cast %32 : vector<8x64xf32> to vector<1x8x64xf32>
    tpu.vector_store %arg6[%c0_18, %c0_19, %c0_20], %35 {strides = array<i32>} : memref<1x8x64xf32, #tpu.memory_space<vmem>>, vector<1x8x64xf32>,
    return
  }
  func.func @transform_0(%arg0: i32, %arg1: i32) -> (i32, i32, i32) {
    %c0_i32 = arith.constant 0 : i32
    %c0_i32_0 = arith.constant 0 : i32
    return %arg0, %c0_i32, %arg1 : i32, i32, i32
  }
  func.func @transform_1(%arg0: i32, %arg1: i32) -> (i32, i32) {
    %c0_i32 = arith.constant 0 : i32
    %c0_i32_0 = arith.constant 0 : i32
    %c0_i32_1 = arith.constant 0 : i32
    return %c0_i32, %c0_i32_0 : i32, i32
  }
  func.func @transform_2(%arg0: i32, %arg1: i32) -> (i32, i32) {
    %c0_i32 = arith.constant 0 : i32
    %c0_i32_0 = arith.constant 0 : i32
    %c0_i32_1 = arith.constant 0 : i32
    return %c0_i32, %c0_i32_0 : i32, i32
  }
  func.func @transform_3(%arg0: i32, %arg1: i32) -> (i32, i32) {
    %c0_i32 = arith.constant 0 : i32
    %c0_i32_0 = arith.constant 0 : i32
    %c0_i32_1 = arith.constant 0 : i32
    return %c0_i32, %c0_i32_0 : i32, i32
  }
  func.func @transform_4(%arg0: i32, %arg1: i32) -> (i32, i32, i32) {
    %c0_i32 = arith.constant 0 : i32
    %c0_i32_0 = arith.constant 0 : i32
    return %arg0, %c0_i32, %arg1 : i32, i32, i32
  }
}

</mosaic_0001>

<bundles_post_ra>
// kernel: downsampling_block.3
= control target key start
LH: loop header
LB: loop body
LE: loop exit
PB: predicated region body
PF: predicated region fallthrough
CT: control target
= control target key end

     0   :  { %s536_s15 = smov 0   ;;  %s538_s16 = smov 0   ;;  %s582_s0 = inlined_call_operand.vmem [shape: bf16[2,36,64], index: 0, kind: input, shape index: {}]   ;;  %s583_s1 = inlined_call_operand.vmem [shape: bf16[8,36], index: 1, kind: input, shape index: {}]   ;;  %s584_s2 = inlined_call_operand.vmem [shape: f32[8,2], index: 2, kind: input, shape index: {}]   ;;  %s585_s3 = inlined_call_operand.vmem [shape: f32[8,3], index: 3, kind: input, shape index: {}]   ;;  %s586_s4 = inlined_call_operand.vmem [shape: f32[2,8,64], index: 4, kind: output, shape index: {}]  }
   0x1   :  { %s540_s17 = smov 0  }
   0x2 LB: > { %s26_s18 = sadd.s32 1, %s498_s16  ;;  %p418_p0 = scmp.ge.s32.totalorder %s502_s17, 1  ;;  %s502_s17 = sphi %s540_s17, %s14_s17   ;;  %s498_s16 = sphi %s538_s16, %s588_s16   ;;  %s494_s15 = sphi %s536_s15, %s587_s15  }
   0x3   : > { %p28_p1 = scmp.ge.s32.totalorder %s26_s18, 2  ;;  %p181_p2 = scmp.lt.s32.totalorder %s502_s17, 3 }
   0x5   : > { %s590_s18 = smov (%p28_p1, %s26_s18), 0  ;;  %p182_p3 = pnand %p418_p0, %p181_p2 }
   0x6   : > { %s504_s21 = smov (!%p182_p3), 1   ;;  %p212_p4 = scmp.lt.s32.totalorder (!%p182_p3), %s494_s15, 1 }
   0x7   : > { %185 = sbr.rel (%p182_p3) target bundleno = 518 (0x206), region = 36  ;;  %s508_s30 = smov (!%p182_p3), 127  }
   0x8   : > { %s510_s5 = smov (!%p182_p3), 2  }
   0xc   : > { %v298_v0 = vld [vmem:[%s584_s2] sm:$0xff]  ;;  %v505_v3 = vmov 0.0   ;;  %vm506_vm0 = vmmov 0   ;;  %s592_s15 = smov (!%p212_p4, %s494_s15), 1  ;;  %vm253_vm1 = vcmask 1041408   ;;  %vm249_vm2 = vcmask 293888  }
   0xd   : > { %v299_v1 = vmul.f32 0.0078125, %v298_v0  ;;  %431 = vmatprep.subr.bf16.mxu0 %v505_v3  ;;  %437 = vmatprep.mubr.msk.bf16.mxu0 %vm506_vm0, %v505_v3  ;;  %s441_s22 = smul.u32 20, %s592_s15  ;;  %v228_v8 = vld [vmem:[%s583_s1] sm:$0xf]  ;;  %v507_v13 = vmov 1   ;;  %v509_v17 = vmov 2  }
   0xe   : > { %473 = vset.pattern.permute.xlu1 %v507_v13  ;;  %v297_v14 = vld [vmem:[%s585_s3] sm:$0xff]  ;;  %474 = vset.pattern.permute.xlu0 %v509_v17  ;;  %s420_s6 = sshll.u32 %s592_s15, 3  ;;  %vm335_vm3 = vcmask 523264  }
   0xf   : > { %v300_v2 = vmul.f32 %v299_v1, %v299_v1  ;;  %s219_s25 = scalar_lea.vmem %s582_s0, %s441_s22  ;;  %v310_v18 = vadd.f32 %v299_v1, %v297_v14  ;;  %s226_s9 = scalar_lea.vmem %s586_s4, %s420_s6 }
  0x10   : > { %v475_v4 = vld [vmem:[%s219_s25 + $0x10] ss:$0 sps:$4 sm:$0x33]   ;;  %v476_v6 = vld [vmem:[%s219_s25 + $0x8] sm:$0xff]   ;;  %v477_v7 = vld [vmem:[%s219_s25] sm:$0xff]  }
  0x11   : > { %302 = vrot.lane.b32.xlu0 %v300_v2, %s504_s21  ;;  %v255_v5 = vsel %vm253_vm1, %v475_v4, 0 }
  0x12   : > { %432 = vmatpush3.bf16.msra.mxu0 %v255_v5 }
  0x13   : > { %433 = vmatprep.subr.bf16.mxu0 %v505_v3 }
  0x16   : > { %434 = vmatpush3.bf16.msra.mxu0 %v476_v6 }
  0x17   : > { %435 = vmatprep.subr.bf16.mxu0 %v505_v3 }
  0x1a   : > { %436 = vmatpush3.bf16.msra.mxu0 %v477_v7 }
  0x1d   : > { %438 = vmatmul.mubr.msk.bf16.vlgmr.msra.gmra.mxu0 %vm249_vm2, %v228_v8 }
  0x83   : > { %v303_v9 = vpop.permute.xlu0 %302 }
  0x84   : > { %v305_v10 = vsub.f32 %v299_v1, %v303_v9 }
  0x86   : > { %v306_v11 = vmax.f32 %v305_v10, 0.0 }
  0x88   : > { %v307_v12 = vadd.f32 1e-05, %v306_v11 }
  0x8a   : > { %478 = vrsqrt.f32 %v307_v12 }
  0x97   : > { %v479_v15 = vpop.eup %478 }
  0x98   : > { %v309_v16 = vmul.f32 %v479_v15, %v297_v14 }
  0x9a   : > { %312 = vrot.lane.b32.xlu0 %v309_v16, %s508_s30 }
  0xdd   : > { %v291_v21 = vpop.f32.mrf.mxu0 }
  0xdf   : > { %v439_v22 = vpop.f32.mrf.mxu0 }
  0xe1   : > { %v294_v23 = vpop.f32.mrf.mxu0 }
  0xe3   : > { %v440_v24 = vpop.f32.mrf.mxu0 }
 0x10c   : > { %v313_v19 = vpop.permute.xlu0 %312 }
 0x10d   : > { %v315_v20 = vmul.f32 %v313_v19, %v310_v18 }
 0x10f   : > { %317 = vrot.lane.b32.xlu1 %v315_v20, %s510_s5 }
 0x113   : > { %322 = vperm.xlu1 %473, %v309_v16  }
 0x181   : > { %v318_v25 = vpop.permute.xlu1 %317 }
 0x182   : > { %v320_v26 = vsub.f32 %v297_v14, %v318_v25 }
 0x184   : > { %328 = vperm.xlu0 %474, %v320_v26  }
 0x18e   : > { %v323_v27 = vpop.permute.xlu1 %322 }
 0x18f   : > { %v325_v28 = vmul.f32 %v323_v27, %v291_v21 }
 0x1ff   : > { %v329_v29 = vpop.permute.xlu0 %328 }
 0x200   : > { %v331_v30 = vadd.f32 %v329_v29, %v325_v28 }
 0x202   : > { %vm332_vm4 = vcmp.gt.f32.partialorder %v331_v30, 0.0  ;;  %v333_v31 = vmul.f32 0.1, %v331_v30 }
 0x204   : > { %v334_v32 = vsel %vm332_vm4, %v331_v30, %v333_v31 }
 0x205   : > { %336 = vst.msk [vmem:[%s226_s9] sm:$0xff] %vm335_vm3, %v334_v32 }
 0x206 PF: > { %s14_s17 = sadd.s32 1, %s502_s17   ;;  %s587_s15 = smov %s498_s16 }
 0x207   : > { %p11_p5 = scmp.ge.s32.totalorder %s14_s17, 4   ;;  %s588_s16 = smov %s590_s18 }
 0x209   :  { %13 = sbr.rel (!%p11_p5) target bundleno = 2 (0x2), region = 66 }

// kernel: downsampling_block.2
= control target key start
LH: loop header
LB: loop body
LE: loop exit
PB: predicated region body
PF: predicated region fallthrough
CT: control target
= control target key end

     0   :  { %s457_s12 = smov 0   ;;  %s459_s13 = smov 0   ;;  %s505_s0 = inlined_call_operand.vmem [shape: bf16[2,36,64], index: 0, kind: input, shape index: {}]   ;;  %s506_s1 = inlined_call_operand.vmem [shape: bf16[8,36], index: 1, kind: input, shape index: {}]   ;;  %s507_s2 = inlined_call_operand.vmem [shape: f32[8,3], index: 2, kind: input, shape index: {}]   ;;  %s508_s3 = inlined_call_operand.vmem [shape: f32[8,2], index: 3, kind: output, shape index: {}]  }
   0x1   :  { %s461_s14 = smov 0  }
   0x2 LB: > { %s25_s15 = sadd.s32 1, %s426_s13  ;;  %p348_p0 = scmp.ge.s32.totalorder %s430_s14, 1  ;;  %s430_s14 = sphi %s461_s14, %s13_s14   ;;  %s426_s13 = sphi %s459_s13, %s510_s13   ;;  %s422_s12 = sphi %s457_s12, %s509_s12  }
   0x3   : > { %p27_p1 = scmp.ge.s32.totalorder %s25_s15, 2  ;;  %p149_p2 = scmp.lt.s32.totalorder %s430_s14, 3 }
   0x5   : > { %s512_s15 = smov (%p27_p1, %s25_s15), 0  ;;  %p150_p3 = pnand %p348_p0, %p149_p2 }
   0x6   : > { %p171_p4 = scmp.lt.s32.totalorder (!%p150_p3), %s422_s12, 1  ;;  %p180_p5 = scmp.eq.s32.totalorder (!%p150_p3), %s422_s12, 0 }
   0x7   : > { %153 = sbr.rel (%p150_p3) target bundleno = 494 (0x1ee), region = 32 }
   0xc   : > { %s172_s16 = scalar_select %p171_p4, %s422_s12, 1  ;;  %vm186_vm0 = vcmask (%p180_p5), 7168   ;;  %v432_v0 = vmov (%p180_p5), 0.0  }
   0xd   : > { %185 = sbr.rel (!%p180_p5) target bundleno = 18 (0x12), region = 36  ;;  %187 = vst.msk [vmem:[#allocation2] sm:$0xff] (%p180_p5), %vm186_vm0, %v432_v0  ;;  %188 = vst.msk [vmem:[#allocation3] sm:$0xff] (%p180_p5), %vm186_vm0, %v432_v0 }
   0xe   : > { %s374_s17 = smul.u32 20, %s172_s16 }
  0x10   : > { %s178_s20 = scalar_lea.vmem %s505_s0, %s374_s17 }
  0x12 PF: > { %v405_v1 = vld [vmem:[%s178_s20 + $0x10] ss:$0 sps:$4 sm:$0x33]   ;;  %v433_v2 = vmov 0.0   ;;  %vm214_vm1 = vcmask 1041408   ;;  %v406_v4 = vld [vmem:[%s178_s20 + $0x8] sm:$0xff]   ;;  %v265_v9 = vlaneseq }
  0x13   : > { %364 = vmatprep.subr.bf16.mxu0 %v433_v2  ;;  %v216_v3 = vsel %vm214_vm1, %v405_v1, 0  ;;  %v258_v5 = vld [vmem:[%s507_s2] sm:$0xff]  ;;  %vm434_vm2 = vmmov 0   ;;  %v435_v6 = vmov 0   ;;  %vm210_vm3 = vcmask 293888   ;;  %p289_p6 = scmp.eq.s32.totalorder %s422_s12, 1 }
  0x14   : > { %365 = vmatpush3.bf16.msra.mxu0 %v216_v3  ;;  %370 = vmatprep.mubr.msk.bf16.mxu0 %vm434_vm2, %v433_v2  ;;  %v407_v7 = vld [vmem:[%s178_s20] sm:$0xff]   ;;  %v266_v10 = vand.u32 127, %v265_v9  ;;  %vm275_vm5 = vcmask 523264   ;;  %vm280_vm6 = vcmask 7168   ;;  %v282_v23 = vld [vmem:[#allocation3] sm:$0xff]  ;;  %s436_s25 = smov (%p289_p6), 1  }
  0x15   : > { %366 = vmatprep.subr.bf16.mxu0 %v433_v2  ;;  %404 = vset.pattern.permute.xlu0 %v435_v6  ;;  %v189_v8 = vld [vmem:[%s506_s1] sm:$0xf]  ;;  %vm301_vm7 = vcmask (%p289_p6), 15368  }
  0x16   : > { %261 = vperm.xlu0 %404, %v258_v5   ;;  %vm270_vm4 = vcmp.lt.s32.totalorder %v266_v10, 64  ;;  %v274_v21 = vld [vmem:[#allocation2] sm:$0xff] }
  0x18   : > { %367 = vmatpush3.bf16.msra.mxu0 %v406_v4 }
  0x19   : > { %368 = vmatprep.subr.bf16.mxu0 %v433_v2 }
  0x1c   : > { %369 = vmatpush3.bf16.msra.mxu0 %v407_v7 }
  0x1f   : > { %371 = vmatmul.mubr.msk.bf16.vlgmr.msra.gmra.mxu0 %vm210_vm3, %v189_v8 }
  0x91   : > { %v262_v11 = vpop.permute.xlu0 %261 }
  0xdf   : > { %v252_v12 = vpop.f32.mrf.mxu0 }
  0xe0   : > { %v264_v13 = vsub.f32 %v252_v12, %v262_v11 }
  0xe1   : > { %v372_v14 = vpop.f32.mrf.mxu0 }
  0xe2   : > { %v273_v15 = vsel %vm270_vm4, %v264_v13, 0.0 }
  0xe3   : > { %v255_v16 = vpop.f32.mrf.mxu0  ;;  %v276_v17 = vsel %vm275_vm5, %v273_v15, 0.0  ;;  %v283_v18 = vmul.f32 %v273_v15, %v273_v15 }
  0xe4   : > { %277 = vadd.xlane.f32.xlu0 %v276_v17 }
  0xe5   : > { %v373_v19 = vpop.f32.mrf.mxu0  ;;  %v284_v20 = vsel %vm275_vm5, %v283_v18, 0.0 }
  0xe6   : > { %285 = vadd.xlane.f32.xlu1 %v284_v20 }
 0x16d   : > { %v278_v22 = vpop.xlane.xlu0 %277 }
 0x16e   : > { %v279_v24 = vadd.f32 %v278_v22, %v274_v21  ;;  %293 = sbr.rel (!%p289_p6) target bundleno = 494 (0x1ee), region = 40 }
 0x16f   : > { %v286_v25 = vpop.xlane.xlu1 %285 }
 0x170   : > { %281 = vst.msk [vmem:[#allocation2] sm:$0xff] %vm280_vm6, %v279_v24  ;;  %v287_v26 = vadd.f32 %v286_v25, %v282_v23 }
 0x172   : > { %288 = vst.msk [vmem:[#allocation3] sm:$0xff] %vm280_vm6, %v287_v26 }
 0x177   : > { %v294_v28 = vld [vmem:[#allocation2] sm:$0xff] }
 0x178   : > { %295 = vst.msk [vmem:[%s508_s3] sm:$0xff] %vm280_vm6, %v294_v28 }
 0x179   : > { %v296_v27 = vld [vmem:[#allocation3] sm:$0xff] }
 0x17a   : > { %298 = vrot.lane.b32.xlu0 %v296_v27, %s436_s25 }
 0x1ec   : > { %v299_v29 = vpop.permute.xlu0 %298 }
 0x1ed   : > { %302 = vst.msk [vmem:[%s508_s3] sm:$0xff] %vm301_vm7, %v299_v29 }
 0x1ee PF: > { %s13_s14 = sadd.s32 1, %s430_s14   ;;  %s509_s12 = smov %s426_s13 }
 0x1ef   : > { %p10_p7 = scmp.ge.s32.totalorder %s13_s14, 4   ;;  %s510_s13 = smov %s512_s15 }
 0x1f1   :  { %12 = sbr.rel (!%p10_p7) target bundleno = 2 (0x2), region = 66 }

</bundles_post_ra>
